<compile_context>
chip_gen: v6e
topology: v6e:2x2x1
jax: 0.10.0
libtpu: 0.0.40
codegen_flags: <defaults>
</compile_context>

<pallas_src>
import functools

import jax
import jax.numpy as jnp
from jax.experimental import pallas as pl
from jax.experimental.pallas import tpu as pltpu


# ------------------------------- helpers ----------------------------------- #

def _pick_tile(dim, cands=(512, 256, 128, 64, 32, 16, 8), min_steps=4):
    """Tile for a cdiv-tiled 'parallel' axis: multiple-of-8 tiles, capped so the
    axis keeps >= min_steps grid steps when `dim` allows it (keeps both v7x
    TensorCores busy while staying DMA/MXU-sized)."""
    if dim <= cands[-1]:
        return dim                       # block == full array dim (always legal)
    for c in cands:
        if pl.cdiv(dim, c) >= min_steps:
            return c
    return cands[-1]


def _pick_reduction_tile(dim, cands=(512, 256, 128)):
    """Reduction-axis tile: must evenly divide `dim` (a padded tail would pollute
    the accumulator), else fall back to the full dim."""
    for c in cands:
        if dim >= c and dim % c == 0:
            return c
    return dim


def _pick_cout_tile(cout):
    """Cout slab size: keep the whole weight resident when small; otherwise tile
    it so only (tn, Cin) weight slabs live in VMEM (v7x has 64 MiB)."""
    if cout <= 1024:
        return cout
    for c in (1024, 512, 256):
        if cout % c == 0:
            return c
    return 128                            # ragged large Cout: cdiv tail handles it


def _vmem_limit(*block_bytes):
    """Scoped-VMEM limit: double-buffered pipeline blocks + slack, at least 16 MiB
    (v5e's default scoped limit is too small), capped at 3/4 of physical VMEM
    (48 MiB on v7x, 96 MiB on v5e/v6e)."""
    try:
        phys = int(pltpu.get_tpu_info().vmem_capacity_bytes)
    except Exception:                      # older jax / interpret mode
        phys = 64 << 20                    # v7x-conservative fallback
    need = 2 * sum(int(b) for b in block_bytes) + (2 << 20)
    return int(min(max(need, 16 << 20), (3 * phys) // 4))


_DN_XWT = (((1,), (1,)), ((), ()))   # contract minor/minor: x @ w.T with w stored (Cout, Cin)


# ----------------------------- Pallas kernels ------------------------------ #

def _det_proj_kernel(x_ref, gw_ref, gb_ref, pw_ref, pb_ref, g_ref, p_ref):
    # x: (tm, Cin); gw/pw: (tn, Cin) un-transposed nn.Linear weight slabs; gb/pb: (1, tn)
    x = x_ref[...]
    g = jax.lax.dot_general(x, gw_ref[...], _DN_XWT,
                            preferred_element_type=jnp.float32)
    p = jax.lax.dot_general(x, pw_ref[...], _DN_XWT,
                            preferred_element_type=jnp.float32)
    g_ref[...] = (g + gb_ref[...]).astype(g_ref.dtype)
    p_ref[...] = (p + pb_ref[...]).astype(p_ref.dtype)


def _linear_kernel(x_ref, w_ref, b_ref, o_ref):
    # x: (tm, Cin), w: (tn, Cin), b: (1, tn)
    acc = jax.lax.dot_general(x_ref[...], w_ref[...], _DN_XWT,
                              preferred_element_type=jnp.float32)
    o_ref[...] = (acc + b_ref[...]).astype(o_ref.dtype)


def _linear_residual_kernel(x_ref, w_ref, b_ref, r_ref, o_ref):
    # x: (tm, Cin), w: (tn, Cin), b: (1, tn), r: (tm, tn)
    acc = jax.lax.dot_general(x_ref[...], w_ref[...], _DN_XWT,
                              preferred_element_type=jnp.float32)
    o_ref[...] = (acc + b_ref[...] + r_ref[...]).astype(o_ref.dtype)


def _attn_kernel(t_ref, p_ref, g_ref, o_ref, tscr_ref, *acc_scratch, scale):
    # t:    (C, tp)  tile of theta(aim).view(B, C, Np)     (free reshape, k-invariant)
    # p:    (C, tn)  tile of phi(detect).view(B, C, Nd)    (free reshape)
    # g:    (C, tn)  tile of g(detect).view(B, C, Nd)      (free reshape)
    # o:    (C, tp)  the TRANSPOSED non_aim tile -> PyTorch's final permute+view is free.
    # tscr: (tp, C)  f32 scratch: theta_x tile = t.T, pre-scaled by 1/Nd.
    # acc_scratch: optional (C, tp) f32 accumulator (only when o dtype != f32).
    acc_ref = acc_scratch[0] if acc_scratch else o_ref
    k = pl.program_id(2)

    @pl.when(k == 0)
    def _():
        # Once per output block: the XLU transpose and the 1/Nd scale are
        # amortized over all Nd/tn reduction steps (their slots are MXU-free).
        tscr_ref[...] = jnp.transpose(t_ref[...]).astype(jnp.float32) * scale
        acc_ref[...] = jnp.zeros_like(acc_ref)

    # f[p, n] = sum_c theta_x[p, c] * phi_x[c, n]          (standard contraction)
    f = jnp.dot(tscr_ref[...], p_ref[...],
                preferred_element_type=jnp.float32)                     # (tp, tn)

    # acc_T[c, p] += sum_n G[c, n] * f[p, n]                (rhs-transposed contraction)
    acc_ref[...] += jax.lax.dot_general(g_ref[...], f, _DN_XWT,
                                        preferred_element_type=jnp.float32)   # (C, tp)

    if acc_scratch:   # finalize copy only needed when accumulating off the output dtype
        @pl.when(k == pl.num_programs(2) - 1)
        def _():
            o_ref[...] = acc_ref[...].astype(o_ref.dtype)


# ------------------------------- wrappers ---------------------------------- #

def det_projection(x2d, g_w, g_b, phi_w, phi_b):
    """g(x) and phi(x) from a single pass over x.  x2d:(M,Cin) -> two (M,Cout)."""
    M, Cin = x2d.shape
    Cout = g_w.shape[0]
    tm = _pick_tile(M)
    tn = _pick_cout_tile(Cout)
    isz = x2d.dtype.itemsize
    limit = _vmem_limit(tm * Cin * isz,                        # x tile
                        2 * (tn * Cin + tn) * isz,             # two weight slabs + biases
                        2 * tm * tn * isz)                     # two output tiles
    wspec = pl.BlockSpec((tn, Cin), lambda i, j: (j, 0))
    bspec = pl.BlockSpec((1, tn), lambda i, j: (0, j))
    ospec = pl.BlockSpec((tm, tn), lambda i, j: (i, j))
    return pl.pallas_call(
        _det_proj_kernel,
        out_shape=(jax.ShapeDtypeStruct((M, Cout), x2d.dtype),
                   jax.ShapeDtypeStruct((M, Cout), x2d.dtype)),
        grid=(pl.cdiv(M, tm), pl.cdiv(Cout, tn)),
        in_specs=[pl.BlockSpec((tm, Cin), lambda i, j: (i, 0)),
                  wspec, bspec, wspec, bspec],
        out_specs=(ospec, ospec),
        compiler_params=pltpu.CompilerParams(
            dimension_semantics=("parallel", "parallel"),
            vmem_limit_bytes=limit),
    )(x2d, g_w, g_b.reshape(1, Cout), phi_w, phi_b.reshape(1, Cout))


def linear(x2d, w, b):
    """y = x2d @ w.T + b ;  x2d:(M,Cin), w:(Cout,Cin), b:(Cout,)."""
    M, Cin = x2d.shape
    Cout = w.shape[0]
    tm = _pick_tile(M)
    tn = _pick_cout_tile(Cout)
    isz = x2d.dtype.itemsize
    limit = _vmem_limit(tm * Cin * isz, (tn * Cin + tn) * isz, tm * tn * isz)
    return pl.pallas_call(
        _linear_kernel,
        out_shape=jax.ShapeDtypeStruct((M, Cout), x2d.dtype),
        grid=(pl.cdiv(M, tm), pl.cdiv(Cout, tn)),
        in_specs=[pl.BlockSpec((tm, Cin), lambda i, j: (i, 0)),
                  pl.BlockSpec((tn, Cin), lambda i, j: (j, 0)),
                  pl.BlockSpec((1, tn), lambda i, j: (0, j))],
        out_specs=pl.BlockSpec((tm, tn), lambda i, j: (i, j)),
        compiler_params=pltpu.CompilerParams(
            dimension_semantics=("parallel", "parallel"),
            vmem_limit_bytes=limit),
    )(x2d, w, b.reshape(1, Cout))


def linear_residual(x2d, w, b, res2d):
    """y = x2d @ w.T + b + res2d  (residual fused into the same kernel)."""
    M, Cin = x2d.shape
    Cout = w.shape[0]
    tm = _pick_tile(M)
    tn = _pick_cout_tile(Cout)
    isz = x2d.dtype.itemsize
    limit = _vmem_limit(tm * Cin * isz, (tn * Cin + tn) * isz,
                        tm * tn * isz, tm * tn * isz)
    return pl.pallas_call(
        _linear_residual_kernel,
        out_shape=jax.ShapeDtypeStruct((M, Cout), x2d.dtype),
        grid=(pl.cdiv(M, tm), pl.cdiv(Cout, tn)),
        in_specs=[pl.BlockSpec((tm, Cin), lambda i, j: (i, 0)),
                  pl.BlockSpec((tn, Cin), lambda i, j: (j, 0)),
                  pl.BlockSpec((1, tn), lambda i, j: (0, j)),
                  pl.BlockSpec((tm, tn), lambda i, j: (i, j))],
        out_specs=pl.BlockSpec((tm, tn), lambda i, j: (i, j)),
        compiler_params=pltpu.CompilerParams(
            dimension_semantics=("parallel", "parallel"),
            vmem_limit_bytes=limit),
    )(x2d, w, b.reshape(1, Cout), res2d)


def fused_attention(theta_r, phi_r, g_r, scale):
    """non_aim^T[b] = ((theta_r[b].T @ phi_r[b]) * scale) @ g_r[b].T  -> (B, C, Np).

    All three inputs arrive in their free .view(B, C, N) layouts (no XLA
    transposes / HBM round trips).  The (Np, Nd) score matrix only lives in
    VMEM; Nd is the 'arbitrary' reduction grid axis; the k-invariant theta tile
    is transposed + pre-scaled once per output block inside the kernel; the
    output is written per-batch transposed so PyTorch's permute+view is free."""
    B, C, Np = theta_r.shape
    Nd = phi_r.shape[-1]

    # tp is the lane dim of the output block: keep it a multiple of 128 (lane-
    # dense stores) whenever Np allows; tiny Np falls back to the full dim.
    if Np < 128:
        tp = Np
    elif Np >= 512:
        tp = 256
    else:
        tp = 128
    tn = _pick_reduction_tile(Nd)    # must divide Nd: no masked tail on a reduction axis
    out_dtype = theta_r.dtype

    kernel = functools.partial(_attn_kernel, scale=float(scale))
    scratch = [pltpu.VMEM((tp, C), jnp.float32)]           # transposed, pre-scaled theta
    if out_dtype != jnp.float32:
        scratch.append(pltpu.VMEM((C, tp), jnp.float32))   # separate f32 accumulator
    isz = theta_r.dtype.itemsize
    limit = _vmem_limit(C * tp * isz, 2 * C * tn * isz, C * tp * isz,
                        tp * C * 4, C * tp * 4)

    return pl.pallas_call(
        kernel,
        out_shape=jax.ShapeDtypeStruct((B, C, Np), out_dtype),
        grid=(B, pl.cdiv(Np, tp), Nd // tn),
        in_specs=[
            pl.BlockSpec((None, C, tp), lambda b, j, k: (b, 0, j)),   # theta view (k-invariant)
            pl.BlockSpec((None, C, tn), lambda b, j, k: (b, 0, k)),   # phi view
            pl.BlockSpec((None, C, tn), lambda b, j, k: (b, 0, k)),   # g   view
        ],
        out_specs=pl.BlockSpec((None, C, tp), lambda b, j, k: (b, 0, j)),
        scratch_shapes=scratch,
        compiler_params=pltpu.CompilerParams(
            dimension_semantics=("parallel", "parallel", "arbitrary"),
            vmem_limit_bytes=limit),
    )(theta_r, phi_r, g_r)


# --------------------------- match_block forward --------------------------- #

def init_match_block_params(key, in_channels):
    """Deterministic init mirroring nn.Linear defaults (uniform +-1/sqrt(fan_in))."""
    C = in_channels  # inter_channels == in_channels in the reference module
    k = 1.0 / jnp.sqrt(jnp.float32(C))
    ks = jax.random.split(key, 8)
    u = lambda kk, shape: jax.random.uniform(kk, shape, jnp.float32, -k, k)
    # TODO(synk): concat_project (Conv2d(2C,1,1)+ReLU), MaxPool2d and BatchNorm2d
    # are constructed in __init__ but never used in forward(); omitted here.
    return {
        "g_w": u(ks[0], (C, C)), "g_b": u(ks[1], (C,)),
        "theta_w": u(ks[2], (C, C)), "theta_b": u(ks[3], (C,)),
        "phi_w": u(ks[4], (C, C)), "phi_b": u(ks[5], (C,)),
        "W_w": u(ks[6], (C, C)), "W_b": u(ks[7], (C,)),
    }


def match_block_forward(params, detect, aim):
    """Reproduces match_block.forward(detect, aim) -> (non_aim, aim)."""
    B, Np, C = aim.shape           # batch_size, num_prop, feat_dim
    Nd = detect.shape[1]

    det2 = detect.reshape(B * Nd, C)
    aim2 = aim.reshape(B * Np, C)

    # g / phi share one read of detect (single fused kernel); theta on aim.
    # NOTE: a_x = g(aim) and fi_div_C are computed by the PyTorch code but never
    # used -> skipped.
    g_det, phi_det = det_projection(det2, params["g_w"], params["g_b"],
                                    params["phi_w"], params["phi_b"])
    theta_aim = linear(aim2, params["theta_w"], params["theta_b"])

    # PyTorch's .view(B, C, -1) is a raw row-major reinterpretation -> all three
    # reshapes below are free (no transposes, no HBM round trips).
    g_r = g_det.reshape(B, C, Nd)            # "d_x before permute"
    phi_r = phi_det.reshape(B, C, Nd)        # phi_x
    theta_r = theta_aim.reshape(B, C, Np)    # theta_x before permute (transposed in-kernel)

    # Fused:  non_aim^T = ((theta_x @ phi_x) / Nd) @ d_x, written as (B, C, Np)
    # so that permute(0,2,1).contiguous().view(B, Np, C) is a free reshape.
    non_aim_t = fused_attention(theta_r, phi_r, g_r, 1.0 / Nd)        # (B, C, Np)
    non_aim_scr = non_aim_t.reshape(B * Np, C)                        # free reshape

    # non_aim = W(non_aim) + aim   (fused linear + bias + residual kernel)
    out = linear_residual(non_aim_scr, params["W_w"], params["W_b"], aim2)
    return out.reshape(B, Np, C), aim


# Pure-JAX reference for correctness checking.
def match_block_reference(params, detect, aim):
    B, Np, C = aim.shape
    Nd = detect.shape[1]
    lin = lambda x, w, b: x @ w.T + b
    g_det = lin(detect, params["g_w"], params["g_b"])
    theta_a = lin(aim, params["theta_w"], params["theta_b"])
    phi_d = lin(detect, params["phi_w"], params["phi_b"])
    d_x = jnp.transpose(g_det.reshape(B, C, Nd), (0, 2, 1))
    theta_x = jnp.transpose(theta_a.reshape(B, C, Np), (0, 2, 1))
    phi_x = phi_d.reshape(B, C, Nd)
    f = jnp.einsum("bpc,bcd->bpd", theta_x, phi_x) / Nd
    non_aim = jnp.einsum("bpd,bdc->bpc", f, d_x)
    non_aim = jnp.transpose(non_aim, (0, 2, 1)).reshape(B, Np, C)
    non_aim = lin(non_aim, params["W_w"], params["W_b"]) + aim
    return non_aim, aim


if __name__ == "__main__":
    key = jax.random.PRNGKey(0)
    k_p, k_d, k_a = jax.random.split(key, 3)

    B, Nd, Np, C = 2, 16, 8, 32   # batch, num_detect, num_prop, feat_dim(=in_channels)
    params = init_match_block_params(k_p, C)
    detect = jax.random.normal(k_d, (B, Nd, C), jnp.float32)
    aim = jax.random.normal(k_a, (B, Np, C), jnp.float32)

    non_aim, aim_out = jax.jit(match_block_forward)(params, detect, aim)
    jax.block_until_ready(non_aim)
    jax.block_until_ready(aim_out)

    ref_non_aim, ref_aim = match_block_reference(params, detect, aim)
    assert jnp.allclose(non_aim, ref_non_aim, atol=1e-4, rtol=1e-4)
    assert jnp.allclose(aim_out, ref_aim)

    print("KERNEL_OK")
</pallas_src>

<mosaic_0001>
module attributes {stable_mosaic.version = 11 : i64} {
  func.func @_linear_kernel(%arg0: i32, %arg1: i32, %arg2: memref<8x32xf32, #tpu.memory_space<vmem>>, %arg3: memref<32x32xf32, #tpu.memory_space<vmem>>, %arg4: memref<1x32xf32, #tpu.memory_space<vmem>>, %arg5: memref<8x32xf32, #tpu.memory_space<vmem>>) attributes {dimension_semantics = [#tpu.dimension_semantics<parallel>, #tpu.dimension_semantics<parallel>], iteration_bounds = array<i64: 2, 1>, scalar_prefetch = 0 : i64, scratch_operands = 0 : i64, tpu.core_type = #tpu.core_type<tc>, window_params = [{transform_indices = @transform_0, window_bounds = array<i64: 8, 32>}, {transform_indices = @transform_1, window_bounds = array<i64: 32, 32>}, {transform_indices = @transform_2, window_bounds = array<i64: 1, 32>}, {transform_indices = @transform_3, window_bounds = array<i64: 8, 32>}]} {
    %c0 = arith.constant 0 : index
    %c0_0 = arith.constant 0 : index
    %0 = vector.load %arg2[%c0, %c0_0] : memref<8x32xf32, #tpu.memory_space<vmem>>, vector<8x32xf32>
    %c0_1 = arith.constant 0 : index
    %c0_2 = arith.constant 0 : index
    %1 = vector.load %arg3[%c0_1, %c0_2] : memref<32x32xf32, #tpu.memory_space<vmem>>, vector<32x32xf32>
    %cst = arith.constant dense<0.000000e+00> : vector<8x32xf32>
    %2 = tpu.matmul %0, %1, %cst {dimension_numbers = #tpu.dot_dimension_numbers<[1], [1], [0], [0], [0, 0, 1, 0], [], []>} : vector<8x32xf32>, vector<32x32xf32>, vector<8x32xf32> -> vector<8x32xf32>
    %c0_3 = arith.constant 0 : index
    %c0_4 = arith.constant 0 : index
    %3 = vector.load %arg4[%c0_3, %c0_4] : memref<1x32xf32, #tpu.memory_space<vmem>>, vector<1x32xf32>
    %4 = vector.broadcast %3 : vector<1x32xf32> to vector<8x32xf32>
    %5 = arith.addf %2, %4 : vector<8x32xf32>
    %c0_5 = arith.constant 0 : index
    %c0_6 = arith.constant 0 : index
    %6 = vector.load %arg5[%c0_5, %c0_6] : memref<8x32xf32, #tpu.memory_space<vmem>>, vector<8x32xf32>
    tpu.vector_store %arg5[%c0_5, %c0_6], %5 {strides = array<i32>} : memref<8x32xf32, #tpu.memory_space<vmem>>, vector<8x32xf32>,
    return
  }
  func.func @transform_0(%arg0: i32, %arg1: i32) -> (i32, i32) {
    %c0_i32 = arith.constant 0 : i32
    %c0_i32_0 = arith.constant 0 : i32
    return %arg0, %c0_i32 : i32, i32
  }
  func.func @transform_1(%arg0: i32, %arg1: i32) -> (i32, i32) {
    %c0_i32 = arith.constant 0 : i32
    %c0_i32_0 = arith.constant 0 : i32
    return %arg1, %c0_i32 : i32, i32
  }
  func.func @transform_2(%arg0: i32, %arg1: i32) -> (i32, i32) {
    %c0_i32 = arith.constant 0 : i32
    %c0_i32_0 = arith.constant 0 : i32
    return %c0_i32, %arg1 : i32, i32
  }
  func.func @transform_3(%arg0: i32, %arg1: i32) -> (i32, i32) {
    %c0_i32 = arith.constant 0 : i32
    return %arg0, %arg1 : i32, i32
  }
}

module attributes {stable_mosaic.version = 11 : i64} {
  func.func @_attn_kernel(%arg0: i32, %arg1: i32, %arg2: i32, %arg3: memref<1x32x8xf32, #tpu.memory_space<vmem>>, %arg4: memref<1x32x16xf32, #tpu.memory_space<vmem>>, %arg5: memref<1x32x16xf32, #tpu.memory_space<vmem>>, %arg6: memref<1x32x8xf32, #tpu.memory_space<vmem>>, %arg7: memref<8x32xf32, #tpu.memory_space<vmem>>) attributes {dimension_semantics = [#tpu.dimension_semantics<parallel>, #tpu.dimension_semantics<parallel>, #tpu.dimension_semantics<arbitrary>], iteration_bounds = array<i64: 2, 1, 1>, scalar_prefetch = 0 : i64, scratch_operands = 1 : i64, tpu.core_type = #tpu.core_type<tc>, window_params = [{transform_indices = @transform_0, window_bounds = array<i64: 1, 32, 8>}, {transform_indices = @transform_1, window_bounds = array<i64: 1, 32, 16>}, {transform_indices = @transform_2, window_bounds = array<i64: 1, 32, 16>}, {transform_indices = @transform_3, window_bounds = array<i64: 1, 32, 8>}]} {
    %c0_i32 = arith.constant 0 : i32
    %0 = arith.cmpi eq, %arg2, %c0_i32 : i32
    %1 = arith.extui %0 : i1 to i32
    %c0_i32_0 = arith.constant 0 : i32
    %2 = arith.cmpi ne, %1, %c0_i32_0 : i32
    scf.if %2 {
      %c0_15 = arith.constant 0 : index
      %c0_16 = arith.constant 0 : index
      %c0_17 = arith.constant 0 : index
      %16 = vector.load %arg3[%c0_15, %c0_16, %c0_17] : memref<1x32x8xf32, #tpu.memory_space<vmem>>, vector<1x32x8xf32>
      %17 = vector.shape_cast %16 : vector<1x32x8xf32> to vector<32x8xf32>
      %18 = tpu.transpose %17, [1, 0] : vector<32x8xf32> -> vector<8x32xf32>
      %cst_18 = arith.constant 6.250000e-02 : f32
      %19 = vector.broadcast %cst_18 : f32 to vector<8x32xf32>
      %20 = arith.mulf %18, %19 : vector<8x32xf32>
      %c0_19 = arith.constant 0 : index
      %c0_20 = arith.constant 0 : index
      %21 = vector.load %arg7[%c0_19, %c0_20] : memref<8x32xf32, #tpu.memory_space<vmem>>, vector<8x32xf32>
      tpu.vector_store %arg7[%c0_19, %c0_20], %20 {strides = array<i32>} : memref<8x32xf32, #tpu.memory_space<vmem>>, vector<8x32xf32>,
      %cst_21 = arith.constant 0.000000e+00 : f32
      %22 = vector.broadcast %cst_21 : f32 to vector<32x8xf32>
      %c0_22 = arith.constant 0 : index
      %c0_23 = arith.constant 0 : index
      %c0_24 = arith.constant 0 : index
      %23 = vector.load %arg6[%c0_22, %c0_23, %c0_24] : memref<1x32x8xf32, #tpu.memory_space<vmem>>, vector<1x32x8xf32>
      %24 = vector.shape_cast %23 : vector<1x32x8xf32> to vector<32x8xf32>
      %25 = vector.shape_cast %22 : vector<32x8xf32> to vector<1x32x8xf32>
      tpu.vector_store %arg6[%c0_22, %c0_23, %c0_24], %25 {strides = array<i32>} : memref<1x32x8xf32, #tpu.memory_space<vmem>>, vector<1x32x8xf32>,
    } else {
    }
    %c0 = arith.constant 0 : index
    %c0_1 = arith.constant 0 : index
    %3 = vector.load %arg7[%c0, %c0_1] : memref<8x32xf32, #tpu.memory_space<vmem>>, vector<8x32xf32>
    %c0_2 = arith.constant 0 : index
    %c0_3 = arith.constant 0 : index
    %c0_4 = arith.constant 0 : index
    %4 = vector.load %arg4[%c0_2, %c0_3, %c0_4] : memref<1x32x16xf32, #tpu.memory_space<vmem>>, vector<1x32x16xf32>
    %5 = vector.shape_cast %4 : vector<1x32x16xf32> to vector<32x16xf32>
    %cst = arith.constant dense<0.000000e+00> : vector<8x16xf32>
    %6 = tpu.matmul %3, %5, %cst {dimension_numbers = #tpu.dot_dimension_numbers<[1], [0], [0], [1], [0, 0, 1, 1], [], []>} : vector<8x32xf32>, vector<32x16xf32>, vector<8x16xf32> -> vector<8x16xf32>
    %c0_5 = arith.constant 0 : index
    %c0_6 = arith.constant 0 : index
    %c0_7 = arith.constant 0 : index
    %7 = vector.load %arg6[%c0_5, %c0_6, %c0_7] : memref<1x32x8xf32, #tpu.memory_space<vmem>>, vector<1x32x8xf32>
    %8 = vector.shape_cast %7 : vector<1x32x8xf32> to vector<32x8xf32>
    %c0_8 = arith.constant 0 : index
    %c0_9 = arith.constant 0 : index
    %c0_10 = arith.constant 0 : index
    %9 = vector.load %arg5[%c0_8, %c0_9, %c0_10] : memref<1x32x16xf32, #tpu.memory_space<vmem>>, vector<1x32x16xf32>
    %10 = vector.shape_cast %9 : vector<1x32x16xf32> to vector<32x16xf32>
    %cst_11 = arith.constant dense<0.000000e+00> : vector<32x8xf32>
    %11 = tpu.matmul %10, %6, %cst_11 {dimension_numbers = #tpu.dot_dimension_numbers<[1], [1], [0], [0], [0, 0, 1, 0], [], []>} : vector<32x16xf32>, vector<8x16xf32>, vector<32x8xf32> -> vector<32x8xf32>
    %12 = arith.addf %8, %11 : vector<32x8xf32>
    %c0_12 = arith.constant 0 : index
    %c0_13 = arith.constant 0 : index
    %c0_14 = arith.constant 0 : index
    %13 = vector.load %arg6[%c0_12, %c0_13, %c0_14] : memref<1x32x8xf32, #tpu.memory_space<vmem>>, vector<1x32x8xf32>
    %14 = vector.shape_cast %13 : vector<1x32x8xf32> to vector<32x8xf32>
    %15 = vector.shape_cast %12 : vector<32x8xf32> to vector<1x32x8xf32>
    tpu.vector_store %arg6[%c0_12, %c0_13, %c0_14], %15 {strides = array<i32>} : memref<1x32x8xf32, #tpu.memory_space<vmem>>, vector<1x32x8xf32>,
    return
  }
  func.func @transform_0(%arg0: i32, %arg1: i32, %arg2: i32) -> (i32, i32, i32) {
    %c0_i32 = arith.constant 0 : i32
    %c0_i32_0 = arith.constant 0 : i32
    return %arg0, %c0_i32, %arg1 : i32, i32, i32
  }
  func.func @transform_1(%arg0: i32, %arg1: i32, %arg2: i32) -> (i32, i32, i32) {
    %c0_i32 = arith.constant 0 : i32
    %c0_i32_0 = arith.constant 0 : i32
    return %arg0, %c0_i32, %arg2 : i32, i32, i32
  }
  func.func @transform_2(%arg0: i32, %arg1: i32, %arg2: i32) -> (i32, i32, i32) {
    %c0_i32 = arith.constant 0 : i32
    %c0_i32_0 = arith.constant 0 : i32
    return %arg0, %c0_i32, %arg2 : i32, i32, i32
  }
  func.func @transform_3(%arg0: i32, %arg1: i32, %arg2: i32) -> (i32, i32, i32) {
    %c0_i32 = arith.constant 0 : i32
    %c0_i32_0 = arith.constant 0 : i32
    return %arg0, %c0_i32, %arg1 : i32, i32, i32
  }
}

module attributes {stable_mosaic.version = 11 : i64} {
  func.func @_det_proj_kernel(%arg0: i32, %arg1: i32, %arg2: memref<8x32xf32, #tpu.memory_space<vmem>>, %arg3: memref<32x32xf32, #tpu.memory_space<vmem>>, %arg4: memref<1x32xf32, #tpu.memory_space<vmem>>, %arg5: memref<32x32xf32, #tpu.memory_space<vmem>>, %arg6: memref<1x32xf32, #tpu.memory_space<vmem>>, %arg7: memref<8x32xf32, #tpu.memory_space<vmem>>, %arg8: memref<8x32xf32, #tpu.memory_space<vmem>>) attributes {dimension_semantics = [#tpu.dimension_semantics<parallel>, #tpu.dimension_semantics<parallel>], iteration_bounds = array<i64: 4, 1>, scalar_prefetch = 0 : i64, scratch_operands = 0 : i64, tpu.core_type = #tpu.core_type<tc>, window_params = [{transform_indices = @transform_0, window_bounds = array<i64: 8, 32>}, {transform_indices = @transform_1, window_bounds = array<i64: 32, 32>}, {transform_indices = @transform_2, window_bounds = array<i64: 1, 32>}, {transform_indices = @transform_3, window_bounds = array<i64: 32, 32>}, {transform_indices = @transform_4, window_bounds = array<i64: 1, 32>}, {transform_indices = @transform_5, window_bounds = array<i64: 8, 32>}, {transform_indices = @transform_6, window_bounds = array<i64: 8, 32>}]} {
    %c0 = arith.constant 0 : index
    %c0_0 = arith.constant 0 : index
    %0 = vector.load %arg2[%c0, %c0_0] : memref<8x32xf32, #tpu.memory_space<vmem>>, vector<8x32xf32>
    %c0_1 = arith.constant 0 : index
    %c0_2 = arith.constant 0 : index
    %1 = vector.load %arg3[%c0_1, %c0_2] : memref<32x32xf32, #tpu.memory_space<vmem>>, vector<32x32xf32>
    %cst = arith.constant dense<0.000000e+00> : vector<8x32xf32>
    %2 = tpu.matmul %0, %1, %cst {dimension_numbers = #tpu.dot_dimension_numbers<[1], [1], [0], [0], [0, 0, 1, 0], [], []>} : vector<8x32xf32>, vector<32x32xf32>, vector<8x32xf32> -> vector<8x32xf32>
    %c0_3 = arith.constant 0 : index
    %c0_4 = arith.constant 0 : index
    %3 = vector.load %arg5[%c0_3, %c0_4] : memref<32x32xf32, #tpu.memory_space<vmem>>, vector<32x32xf32>
    %cst_5 = arith.constant dense<0.000000e+00> : vector<8x32xf32>
    %4 = tpu.matmul %0, %3, %cst_5 {dimension_numbers = #tpu.dot_dimension_numbers<[1], [1], [0], [0], [0, 0, 1, 0], [], []>} : vector<8x32xf32>, vector<32x32xf32>, vector<8x32xf32> -> vector<8x32xf32>
    %c0_6 = arith.constant 0 : index
    %c0_7 = arith.constant 0 : index
    %5 = vector.load %arg4[%c0_6, %c0_7] : memref<1x32xf32, #tpu.memory_space<vmem>>, vector<1x32xf32>
    %6 = vector.broadcast %5 : vector<1x32xf32> to vector<8x32xf32>
    %7 = arith.addf %2, %6 : vector<8x32xf32>
    %c0_8 = arith.constant 0 : index
    %c0_9 = arith.constant 0 : index
    %8 = vector.load %arg7[%c0_8, %c0_9] : memref<8x32xf32, #tpu.memory_space<vmem>>, vector<8x32xf32>
    tpu.vector_store %arg7[%c0_8, %c0_9], %7 {strides = array<i32>} : memref<8x32xf32, #tpu.memory_space<vmem>>, vector<8x32xf32>,
    %c0_10 = arith.constant 0 : index
    %c0_11 = arith.constant 0 : index
    %9 = vector.load %arg6[%c0_10, %c0_11] : memref<1x32xf32, #tpu.memory_space<vmem>>, vector<1x32xf32>
    %10 = vector.broadcast %9 : vector<1x32xf32> to vector<8x32xf32>
    %11 = arith.addf %4, %10 : vector<8x32xf32>
    %c0_12 = arith.constant 0 : index
    %c0_13 = arith.constant 0 : index
    %12 = vector.load %arg8[%c0_12, %c0_13] : memref<8x32xf32, #tpu.memory_space<vmem>>, vector<8x32xf32>
    tpu.vector_store %arg8[%c0_12, %c0_13], %11 {strides = array<i32>} : memref<8x32xf32, #tpu.memory_space<vmem>>, vector<8x32xf32>,
    return
  }
  func.func @transform_0(%arg0: i32, %arg1: i32) -> (i32, i32) {
    %c0_i32 = arith.constant 0 : i32
    %c0_i32_0 = arith.constant 0 : i32
    return %arg0, %c0_i32 : i32, i32
  }
  func.func @transform_1(%arg0: i32, %arg1: i32) -> (i32, i32) {
    %c0_i32 = arith.constant 0 : i32
    %c0_i32_0 = arith.constant 0 : i32
    return %arg1, %c0_i32 : i32, i32
  }
  func.func @transform_2(%arg0: i32, %arg1: i32) -> (i32, i32) {
    %c0_i32 = arith.constant 0 : i32
    %c0_i32_0 = arith.constant 0 : i32
    return %c0_i32, %arg1 : i32, i32
  }
  func.func @transform_3(%arg0: i32, %arg1: i32) -> (i32, i32) {
    %c0_i32 = arith.constant 0 : i32
    %c0_i32_0 = arith.constant 0 : i32
    return %arg1, %c0_i32 : i32, i32
  }
  func.func @transform_4(%arg0: i32, %arg1: i32) -> (i32, i32) {
    %c0_i32 = arith.constant 0 : i32
    %c0_i32_0 = arith.constant 0 : i32
    return %c0_i32, %arg1 : i32, i32
  }
  func.func @transform_5(%arg0: i32, %arg1: i32) -> (i32, i32) {
    %c0_i32 = arith.constant 0 : i32
    return %arg0, %arg1 : i32, i32
  }
  func.func @transform_6(%arg0: i32, %arg1: i32) -> (i32, i32) {
    %c0_i32 = arith.constant 0 : i32
    return %arg0, %arg1 : i32, i32
  }
}

module attributes {stable_mosaic.version = 11 : i64} {
  func.func @_linear_residual_kernel(%arg0: i32, %arg1: i32, %arg2: memref<8x32xf32, #tpu.memory_space<vmem>>, %arg3: memref<32x32xf32, #tpu.memory_space<vmem>>, %arg4: memref<1x32xf32, #tpu.memory_space<vmem>>, %arg5: memref<8x32xf32, #tpu.memory_space<vmem>>, %arg6: memref<8x32xf32, #tpu.memory_space<vmem>>) attributes {dimension_semantics = [#tpu.dimension_semantics<parallel>, #tpu.dimension_semantics<parallel>], iteration_bounds = array<i64: 2, 1>, scalar_prefetch = 0 : i64, scratch_operands = 0 : i64, tpu.core_type = #tpu.core_type<tc>, window_params = [{transform_indices = @transform_0, window_bounds = array<i64: 8, 32>}, {transform_indices = @transform_1, window_bounds = array<i64: 32, 32>}, {transform_indices = @transform_2, window_bounds = array<i64: 1, 32>}, {transform_indices = @transform_3, window_bounds = array<i64: 8, 32>}, {transform_indices = @transform_4, window_bounds = array<i64: 8, 32>}]} {
    %c0 = arith.constant 0 : index
    %c0_0 = arith.constant 0 : index
    %0 = vector.load %arg2[%c0, %c0_0] : memref<8x32xf32, #tpu.memory_space<vmem>>, vector<8x32xf32>
    %c0_1 = arith.constant 0 : index
    %c0_2 = arith.constant 0 : index
    %1 = vector.load %arg3[%c0_1, %c0_2] : memref<32x32xf32, #tpu.memory_space<vmem>>, vector<32x32xf32>
    %cst = arith.constant dense<0.000000e+00> : vector<8x32xf32>
    %2 = tpu.matmul %0, %1, %cst {dimension_numbers = #tpu.dot_dimension_numbers<[1], [1], [0], [0], [0, 0, 1, 0], [], []>} : vector<8x32xf32>, vector<32x32xf32>, vector<8x32xf32> -> vector<8x32xf32>
    %c0_3 = arith.constant 0 : index
    %c0_4 = arith.constant 0 : index
    %3 = vector.load %arg4[%c0_3, %c0_4] : memref<1x32xf32, #tpu.memory_space<vmem>>, vector<1x32xf32>
    %4 = vector.broadcast %3 : vector<1x32xf32> to vector<8x32xf32>
    %5 = arith.addf %2, %4 : vector<8x32xf32>
    %c0_5 = arith.constant 0 : index
    %c0_6 = arith.constant 0 : index
    %6 = vector.load %arg5[%c0_5, %c0_6] : memref<8x32xf32, #tpu.memory_space<vmem>>, vector<8x32xf32>
    %7 = arith.addf %5, %6 : vector<8x32xf32>
    %c0_7 = arith.constant 0 : index
    %c0_8 = arith.constant 0 : index
    %8 = vector.load %arg6[%c0_7, %c0_8] : memref<8x32xf32, #tpu.memory_space<vmem>>, vector<8x32xf32>
    tpu.vector_store %arg6[%c0_7, %c0_8], %7 {strides = array<i32>} : memref<8x32xf32, #tpu.memory_space<vmem>>, vector<8x32xf32>,
    return
  }
  func.func @transform_0(%arg0: i32, %arg1: i32) -> (i32, i32) {
    %c0_i32 = arith.constant 0 : i32
    %c0_i32_0 = arith.constant 0 : i32
    return %arg0, %c0_i32 : i32, i32
  }
  func.func @transform_1(%arg0: i32, %arg1: i32) -> (i32, i32) {
    %c0_i32 = arith.constant 0 : i32
    %c0_i32_0 = arith.constant 0 : i32
    return %arg1, %c0_i32 : i32, i32
  }
  func.func @transform_2(%arg0: i32, %arg1: i32) -> (i32, i32) {
    %c0_i32 = arith.constant 0 : i32
    %c0_i32_0 = arith.constant 0 : i32
    return %c0_i32, %arg1 : i32, i32
  }
  func.func @transform_3(%arg0: i32, %arg1: i32) -> (i32, i32) {
    %c0_i32 = arith.constant 0 : i32
    return %arg0, %arg1 : i32, i32
  }
  func.func @transform_4(%arg0: i32, %arg1: i32) -> (i32, i32) {
    %c0_i32 = arith.constant 0 : i32
    return %arg0, %arg1 : i32, i32
  }
}

</mosaic_0001>

<bundles_post_ra>
// kernel: match_block_forward.5
= control target key start
LH: loop header
LB: loop body
LE: loop exit
PB: predicated region body
PF: predicated region fallthrough
CT: control target
= control target key end

     0   :  { %s525_s12 = smov 0   ;;  %s527_s13 = smov 0   ;;  %s579_s0 = inlined_call_operand.vmem [shape: f32[16,32], index: 0, kind: input, shape index: {}]   ;;  %s580_s1 = inlined_call_operand.vmem [shape: f32[32,32], index: 1, kind: input, shape index: {}]   ;;  %s581_s2 = inlined_call_operand.vmem [shape: f32[1,32], index: 2, kind: input, shape index: {}]   ;;  %s582_s3 = inlined_call_operand.vmem [shape: f32[16,32], index: 3, kind: output, shape index: {}]  }
   0x1   :  { %s529_s14 = smov 0  }
   0x2 LB: > { %s25_s15 = sadd.s32 1, %s497_s13  ;;  %p426_p0 = scmp.ge.s32.totalorder %s501_s14, 1  ;;  %s501_s14 = sphi %s529_s14, %s13_s14   ;;  %s497_s13 = sphi %s527_s13, %s584_s13   ;;  %s493_s12 = sphi %s525_s12, %s583_s12  }
   0x3   : > { %p27_p1 = scmp.ge.s32.totalorder %s25_s15, 2  ;;  %p169_p2 = scmp.lt.s32.totalorder %s501_s14, 3 }
   0x5   : > { %s586_s15 = smov (%p27_p1, %s25_s15), 0  ;;  %p170_p3 = pnand %p426_p0, %p169_p2 }
   0x6   : > { %p202_p4 = scmp.lt.s32.totalorder (!%p170_p3), %s493_s12, 1 }
   0x7   : > { %173 = sbr.rel (%p170_p3) target bundleno = 225 (0xe1), region = 32 }
   0xc   : > { %v226_v0 = vld [vmem:[%s580_s1 + $0x18] sm:$0xff]  ;;  %vm234_vm0 = vcmask 261120   ;;  %v503_v1 = vmov 0.0   ;;  %vm504_vm1 = vmmov 0   ;;  %v225_v2 = vld [vmem:[%s580_s1 + $0x10] sm:$0xff]  ;;  %s588_s12 = smov (!%p202_p4, %s493_s12), 1 }
   0xd   : > { %442 = vmatprep.subr.mxu0 %v503_v1  ;;  %450 = vmatprep.mubr.msk.f32.mxu0 %vm504_vm1, %v503_v1  ;;  %v224_v3 = vld [vmem:[%s580_s1 + $0x8] sm:$0xff]  ;;  %s427_s22 = sshll.u32 %s588_s12, 3  ;;  %v223_v4 = vld [vmem:[%s580_s1] sm:$0xff] }
   0xe   : > { %443 = vmatpush3.xpose.msk.msra.mxu0 %vm234_vm0, %v226_v0  ;;  %s205_s27 = scalar_lea.vmem %s579_s0, %s427_s22  ;;  %v429_v6 = vld [vmem:[%s581_s2] ss:$0 sm:$0xff]  ;;  %s221_s5 = scalar_lea.vmem %s582_s3, %s427_s22 }
   0xf   : > { %444 = vmatprep.subr.mxu0 %v503_v1  ;;  %v222_v5 = vld [vmem:[%s205_s27] sm:$0xff] }
  0x12   : > { %445 = vmatpush3.xpose.msk.msra.mxu0 %vm234_vm0, %v225_v2 }
  0x13   : > { %446 = vmatprep.subr.mxu0 %v503_v1 }
  0x16   : > { %447 = vmatpush3.xpose.msk.msra.mxu0 %vm234_vm0, %v224_v3 }
  0x17   : > { %448 = vmatprep.subr.mxu0 %v503_v1 }
  0x1a   : > { %449 = vmatpush3.xpose.msk.msra.mxu0 %vm234_vm0, %v223_v4 }
  0x1d   : > { %451 = vmatmul.mubr.msk.f32.vlgmr.msra.gmra.mxu0 %vm234_vm0, %v222_v5 }
  0xdd   : > { %v316_v7 = vpop.f32.mrf.mxu0 }
  0xde   : > { %v317_v8 = vadd.f32 %v429_v6, %v316_v7 }
  0xdf   : > { %v452_v9 = vpop.f32.mrf.mxu0 }
  0xe0   : > { %320 = vst.msk [vmem:[%s221_s5] sm:$0xff] %vm234_vm0, %v317_v8 }
  0xe1 PF: > { %s13_s14 = sadd.s32 1, %s501_s14   ;;  %s583_s12 = smov %s497_s13 }
  0xe2   : > { %p10_p5 = scmp.ge.s32.totalorder %s13_s14, 4   ;;  %s584_s13 = smov %s586_s15 }
  0xe4   :  { %12 = sbr.rel (!%p10_p5) target bundleno = 2 (0x2), region = 68 }

// kernel: match_block_forward.4
= control target key start
LH: loop header
LB: loop body
LE: loop exit
PB: predicated region body
PF: predicated region fallthrough
CT: control target
= control target key end

     0   :  { %12 = vsyncpa [#allocation3], 0  ;;  %s1225_s0 = inlined_call_operand.hbm [shape: f32[32,32], index: 0, kind: input, shape index: {}]   ;;  %s1226_s1 = inlined_call_operand.hbm [shape: f32[32,32], index: 1, kind: input, shape index: {}]   ;;  %s1227_s2 = inlined_call_operand.vmem [shape: f32[1,32], index: 2, kind: input, shape index: {}]   ;;  %s1228_s3 = inlined_call_operand.hbm [shape: f32[32,32], index: 3, kind: input, shape index: {}]   ;;  %s1229_s4 = inlined_call_operand.vmem [shape: f32[1,32], index: 4, kind: input, shape index: {}]   ;;  %s1230_s5 = inlined_call_operand.vmem [shape: f32[32,32], index: 5, kind: output, shape index: {0}]   ;;  %s1231_s6 = inlined_call_operand.vmem [shape: f32[32,32], index: 6, kind: output, shape index: {1}]  }
   0x1   :  { %14 = vsyncpa [#allocation3 + $0x1], 0 }
   0x2   :  { %15 = vsyncpa [#allocation5], 0  ;;  %s1065_s21 = smov 0   ;;  %s1067_s22 = smov 0  }
   0x3   :  { %s1069_s23 = smov 0   ;;  %s1071_s24 = smov 0  }
   0x4   :  { %s1073_s25 = smov 0   ;;  %s1075_s26 = smov 0  }
   0x5 LB: > { %s745_s27 = sadd.s32 4294967295, %s1021_s26   ;;  %p53_p0 = scmp.ne.s32.totalorder %s1005_s22, %s1001_s21  ;;  %s1021_s26 = sphi %s1075_s26, %s21_s26   ;;  %s1017_s25 = sphi %s1073_s25, %s1244_s25   ;;  %s1013_s24 = sphi %s1071_s24, %s1243_s24   ;;  %s1009_s23 = sphi %s1069_s23, %s1242_s23   ;;  %s1005_s22 = sphi %s1067_s22, %s1241_s22   ;;  %s1001_s21 = sphi %s1065_s21, %s1240_s21  }
   0x6   : > { %p1095_p1 = scmp.eq.s32.totalorder %s745_s27, 0  ;;  %p747_p2 = scmp.ge.s32.totalorder %s1021_s26, 1 }
   0x7   : > { %p224_p3 = scmp.lt.s32.totalorder %s1021_s26, 5  ;;  %s1023_s7 = smov [#allocation4]  }
   0x8   : > { %s1234_s28 = scalar_select %p1095_p1, 1, 0 }
   0x9   : > { %p1103_p4 = por %p1095_p1, %p53_p0  ;;  %p1107_p5 = pnand %p747_p2, %p224_p3 }
   0xa   : > { %s239_s8 = sshll.u32 %s1023_s7, 4  ;;  %s1024_s10 = smov [#allocation6]   ;;  %s240_s8 = int_to_ptr.vmem [resolvable:$true] %s239_s8 }
   0xb   : > { %p817_p6 = pneg %p1107_p5  ;;  %s261_s11 = sshll.u32 %s1024_s10, 4  ;;  %s262_s11 = int_to_ptr.vmem [resolvable:$true] %s261_s11 }
   0xc   : > { %s898_s12 = scalar_lea.vmem %s240_s8, 512  ;;  %p906_p12 = scmp.lt.s32.totalorder %s240_s8, %s240_s8 }
   0xd   : > { %p1115_p7 = pnand %p817_p6, %p1095_p1  ;;  %p899_p9 = scmp.ne.s32.totalorder %s240_s8, %s898_s12 }
   0xe   : > { %p907_p13 = scmp.lt.s32.totalorder %s898_s12, %s898_s12 }
   0xf   : > { %p889_p8 = pneg %p1115_p7 }
  0x10   : > { %p908_p0 = por %p907_p13, %p906_p12 }
  0x11   : > { %p901_p10 = pnand %p899_p9, %p889_p8 }
  0x13   : > { %p902_p11 = pneg %p901_p10 }
  0x15   : > { %p909_p2 = pnand %p908_p0, %p902_p11 }
  0x17   : > { %912 = shalt.err (!%p909_p2)
}
  0x18   : > { %s1025_s13 = smov 128   ;;  %s1026_s14 = smov 8  }
  0x19   : > { %820 = dma.hbm_to_vmem [thread:$0]  (!%p1115_p7), %s1226_s1, 512, %s240_s8, [#allocation5], %s1025_s13, %s1025_s13, %s1026_s14  }
  0x1a   : > { %s924_s17 = scalar_lea.vmem %s262_s11, 512  ;;  %p932_p10 = scmp.lt.s32.totalorder %s262_s11, %s262_s11 }
  0x1b   : > { %p925_p3 = scmp.ne.s32.totalorder %s262_s11, %s924_s17  ;;  %p933_p1 = scmp.lt.s32.totalorder %s924_s17, %s924_s17 }
  0x1d   : > { %p927_p6 = pnand %p925_p3, %p889_p8  ;;  %p934_p12 = por %p933_p1, %p932_p10 }
  0x1f   : > { %p928_p9 = pneg %p927_p6 }
  0x21   : > { %p935_p11 = pnand %p934_p12, %p928_p9 }
  0x23   : > { %938 = shalt.err (!%p935_p11)
}
  0x24   : > { %823 = dma.hbm_to_vmem [thread:$0]  (!%p1115_p7), %s1228_s3, 512, %s262_s11, [#allocation5], %s1025_s13, %s1025_s13, %s1026_s14  }
  0x25   : > { %s33_s20 = sadd.s32 1, %s1017_s25  ;;  %s40_s21 = sadd.s32 1, %s1009_s23 }
  0x26   : > { %p35_p1 = scmp.ge.s32.totalorder %s33_s20, 4  ;;  %p47_p8 = scmp.ne.s32.totalorder %s1009_s23, %s1005_s22 }
  0x27   : > { %p48_p13 = scmp.eq.s32.totalorder %s1021_s26, 0  ;;  %p830_p0 = scmp.lt.s32.totalorder %s1021_s26, 4 }
  0x28   : > { %s1246_s20 = smov (%p35_p1, %s33_s20), 0  ;;  %s281_s27 = sand.u32 1, %s1009_s23  }
  0x29   : > { %p49_p2 = por %p48_p13, %p47_p8  ;;  %s37_s7 = ssub.s32 %s1017_s25, %s1246_s20 }
  0x2a   : > { %p38_p3 = scmp.eq.s32.totalorder %s37_s7, 0  ;;  %s753_s8 = sshll.u32 %s281_s27, 3 }
  0x2b   : > { %s754_s9 = sshll.u32 %s1017_s25, 7  ;;  %s285_s14 = scalar_lea.vmem [#allocation2], %s753_s8 }
  0x2c   : > { %s1150_s10 = scalar_select %p38_p3, %s1009_s23, %s40_s21  }
  0x2d   : > { %s290_s13 = scalar_lea.hbm %s1225_s0, %s754_s9  ;;  %s292_s15 = sshll.u32 %s285_s14, 4  ;;  %s293_s15 = int_to_ptr.vmem [resolvable:$true] %s292_s15 }
  0x2e   : > { %p1157_p7 = pnand %p830_p0, %p49_p2  ;;  %s282_s17 = scalar_lea.sflag [#allocation3], %s281_s27 }
  0x2f   : > { %s952_s18 = scalar_lea.vmem %s293_s15, 128  ;;  %s1027_s19 = smov [#allocation2]  }
  0x30   : > { %p941_p6 = pneg %p1157_p7  ;;  %p953_p9 = scmp.ne.s32.totalorder %s293_s15, %s952_s18 }
  0x31   : > { %s957_s21 = sshll.u32 %s1027_s19, 4  ;;  %s958_s21 = int_to_ptr.vmem [resolvable:$false] %s957_s21 }
  0x32   : > { %p955_p10 = pnand %p953_p9, %p941_p6  ;;  %s959_s7 = scalar_lea.vmem %s958_s21, 256 }
  0x33   : > { %p960_p11 = scmp.lt.s32.totalorder %s293_s15, %s958_s21  ;;  %p961_p1 = scmp.lt.s32.totalorder %s959_s7, %s952_s18 }
  0x34   : > { %p956_p12 = pneg %p955_p10 }
  0x35   : > { %p962_p8 = por %p961_p1, %p960_p11 }
  0x37   : > { %p963_p13 = pnand %p962_p8, %p956_p12 }
  0x39   : > { %966 = shalt.err (!%p963_p13)
}
  0x3a   : > { %827 = dma.hbm_to_vmem [thread:$0]  (!%p1157_p7), %s290_s13, 128, %s293_s15, %s282_s17  }
  0x3b   : > { %301 = sbr.rel (%p1107_p5) target bundleno = 282 (0x11a), region = 40  ;;  %s303_s27 = sand.u32 (!%p1107_p5), 1, %s1005_s22  }
  0x3c   : > { %s1168_s8 = sshll.u32 (!%p1107_p5), %s303_s27, 3  ;;  %s304_s9 = scalar_lea.sflag (!%p1107_p5), [#allocation3], %s303_s27 }
  0x3d   : > { %s307_s12 = scalar_lea.vmem (!%p1107_p5), [#allocation2], %s1168_s8 }
  0x40   : > { %992 = dma.done.wait (%p1103_p4), %s304_s9, 128  }
  0x41   : > { %994 = vsyncadd (%p1103_p4), %s304_s9, 4294967168  ;;  %p1239_p0 = scmp.ne.s32.totalorder %s1234_s28, 0 }
  0x43   : > { %996 = dma.done.wait (%p1239_p0), [#allocation5], 1024  }
  0x44   : > { %998 = vsyncadd (%p1239_p0), [#allocation5], 4294966272  ;;  %v1028_v0 = vmov 0.0   ;;  %vm1029_vm0 = vmmov 0   ;;  %vm397_vm1 = vcmask 261120   ;;  %v385_v1 = vld [vmem:[#allocation4 + $0x18] sm:$0xff] }
  0x45   : > { %785 = vmatprep.subr.mxu0 %v1028_v0  ;;  %796 = vmatprep.subr.mxu1 %v1028_v0  ;;  %v389_v2 = vld [vmem:[#allocation6 + $0x18] sm:$0xff]  ;;  %v384_v3 = vld [vmem:[#allocation4 + $0x10] sm:$0xff]  ;;  %v383_v5 = vld [vmem:[#allocation4 + $0x8] sm:$0xff]  ;;  %p367_p4 = scmp.lt.s32.totalorder %s1013_s24, 3 }
  0x46   : > { %793 = vmatprep.mubr.msk.f32.mxu0 %vm1029_vm0, %v1028_v0  ;;  %804 = vmatprep.mubr.msk.f32.mxu1 %vm1029_vm0, %v1028_v0  ;;  %v388_v4 = vld [vmem:[#allocation6 + $0x10] sm:$0xff]  ;;  %v387_v6 = vld [vmem:[#allocation6 + $0x8] sm:$0xff]  ;;  %v382_v7 = vld [vmem:[#allocation4] sm:$0xff] }
  0x47   : > { %786 = vmatpush3.xpose.msk.msra.mxu0 %vm397_vm1, %v385_v1  ;;  %797 = vmatpush3.xpose.msk.msra.mxu1 %vm397_vm1, %v389_v2  ;;  %v386_v8 = vld [vmem:[#allocation6] sm:$0xff]  ;;  %v381_v9 = vld [vmem:[%s307_s12] sm:$0xff]  ;;  %s1248_s24 = smov (!%p367_p4, %s1013_s24), 3 }
  0x48   : > { %787 = vmatprep.subr.mxu0 %v1028_v0  ;;  %798 = vmatprep.subr.mxu1 %v1028_v0  ;;  %s759_s28 = sshll.u32 %s1248_s24, 3  ;;  %v761_v10 = vld [vmem:[%s1227_s2] ss:$0 sm:$0xff] }
  0x49   : > { %v767_v11 = vld [vmem:[%s1229_s4] ss:$0 sm:$0xff]  ;;  %s373_s16 = scalar_lea.vmem %s1230_s5, %s759_s28  ;;  %s380_s19 = scalar_lea.vmem %s1231_s6, %s759_s28 }
  0x4b   : > { %788 = vmatpush3.xpose.msk.msra.mxu0 %vm397_vm1, %v384_v3  ;;  %799 = vmatpush3.xpose.msk.msra.mxu1 %vm397_vm1, %v388_v4 }
  0x4c   : > { %789 = vmatprep.subr.mxu0 %v1028_v0  ;;  %800 = vmatprep.subr.mxu1 %v1028_v0 }
  0x4f   : > { %790 = vmatpush3.xpose.msk.msra.mxu0 %vm397_vm1, %v383_v5  ;;  %801 = vmatpush3.xpose.msk.msra.mxu1 %vm397_vm1, %v387_v6 }
  0x50   : > { %791 = vmatprep.subr.mxu0 %v1028_v0  ;;  %802 = vmatprep.subr.mxu1 %v1028_v0 }
  0x53   : > { %792 = vmatpush3.xpose.msk.msra.mxu0 %vm397_vm1, %v382_v7  ;;  %803 = vmatpush3.xpose.msk.msra.mxu1 %vm397_vm1, %v386_v8 }
  0x56   : > { %794 = vmatmul.mubr.msk.f32.vlgmr.msra.gmra.mxu0 %vm397_vm1, %v381_v9  ;;  %805 = vmatmul.mubr.msk.f32.vlgmr.msra.gmra.mxu1 %vm397_vm1, %v381_v9 }
 0x116   : > { %v479_v12 = vpop.f32.mrf.mxu0  ;;  %v569_v13 = vpop.f32.mrf.mxu1 }
 0x117   : > { %v480_v14 = vadd.f32 %v761_v10, %v479_v12  ;;  %v570_v15 = vadd.f32 %v767_v11, %v569_v13 }
 0x118   : > { %v795_v16 = vpop.f32.mrf.mxu0  ;;  %v806_v17 = vpop.f32.mrf.mxu1 }
 0x119   : > { %483 = vst.msk [vmem:[%s373_s16] sm:$0xff] %vm397_vm1, %v480_v14  ;;  %573 = vst.msk [vmem:[%s380_s19] sm:$0xff] %vm397_vm1, %v570_v15 }
 0x11a PF: > { %s21_s26 = sadd.s32 1, %s1021_s26   ;;  %s1240_s21 = smov %s1005_s22 }
 0x11b   : > { %p18_p5 = scmp.ge.s32.totalorder %s21_s26, 6   ;;  %s1241_s22 = smov %s1009_s23 }
 0x11c   : > { %s1242_s23 = smov %s1150_s10  ;;  %s1243_s24 = smov %s1017_s25 }
 0x11d   : > { %s1244_s25 = smov %s1246_s20  ;;  %20 = sbr.rel (!%p18_p5) target bundleno = 5 (0x5), region = 108 }
 0x122   :  { %619 = vsyncpa [#allocation3], 1 }
 0x123   :  { %621 = vsyncpa [#allocation3 + $0x1], 1 }
 0x124   :  { %622 = vsyncpa [#allocation5], 1 }

// kernel: match_block_forward.6
= control target key start
LH: loop header
LB: loop body
LE: loop exit
PB: predicated region body
PF: predicated region fallthrough
CT: control target
= control target key end

     0   :  { %s764_s12 = smov 0   ;;  %s766_s13 = smov 0   ;;  %s837_s0 = inlined_call_operand.vmem [shape: f32[2,32,8], index: 0, kind: input, shape index: {}]   ;;  %s838_s1 = inlined_call_operand.vmem [shape: f32[2,32,16], index: 1, kind: input, shape index: {}]   ;;  %s839_s2 = inlined_call_operand.vmem [shape: f32[2,32,16], index: 2, kind: input, shape index: {}]   ;;  %s840_s3 = inlined_call_operand.vmem [shape: f32[2,32,8], index: 3, kind: output, shape index: {}]  }
   0x1   :  { %s768_s14 = smov 0  }
   0x2 LB: > { %s32_s15 = sadd.s32 1, %s736_s13  ;;  %p642_p0 = scmp.ge.s32.totalorder %s740_s14, 1  ;;  %s740_s14 = sphi %s768_s14, %s13_s14   ;;  %s736_s13 = sphi %s766_s13, %s842_s13   ;;  %s732_s12 = sphi %s764_s12, %s841_s12  }
   0x3   : > { %p34_p1 = scmp.ge.s32.totalorder %s32_s15, 2  ;;  %p193_p2 = scmp.lt.s32.totalorder %s740_s14, 3 }
   0x5   : > { %s844_s15 = smov (%p34_p1, %s32_s15), 0  ;;  %p194_p3 = pnand %p642_p0, %p193_p2 }
   0x6   : > { %p239_p4 = scmp.lt.s32.totalorder (!%p194_p3), %s732_s12, 1 }
   0x7   : > { %197 = sbr.rel (%p194_p3) target bundleno = 550 (0x226), region = 32 }
   0xc   : > { %s846_s12 = smov (!%p239_p4, %s732_s12), 1  ;;  %v742_v1 = vmov 0.0   ;;  %vm743_vm0 = vmmov 0   ;;  %vm312_vm1 = vcmask 261120   ;;  %vm406_vm2 = vcmask 130048  }
   0xd   : > { %s782_s16 = sshll.u32 %s846_s12, 5  ;;  %673 = vmatprep.subr.mxu0 %v742_v1  ;;  %681 = vmatprep.mubr.msk.f32.mxu0 %vm743_vm0, %v742_v1  ;;  %vm314_vm3 = vcmask 64512  }
   0xe   : > { %s246_s19 = scalar_lea.vmem %s837_s0, %s782_s16  ;;  %s254_s22 = scalar_lea.vmem %s838_s1, %s782_s16 }
   0xf   : > { %v275_v0 = vld [vmem:[%s246_s19] sm:$0xff]  ;;  %v323_v2 = vld [vmem:[%s254_s22 + $0x18] sm:$0xff]  ;;  %v322_v3 = vld [vmem:[%s254_s22 + $0x10] sm:$0xff]  ;;  %s262_s25 = scalar_lea.vmem %s839_s2, %s782_s16  ;;  %s801_s28 = scalar_lea.vmem %s840_s3, %s782_s16 }
  0x10   : > { %279 = vxpose.xlu0.b32.start [1/4] (short) (narrow) %v275_v0, 8  ;;  %v276_v4 = vld [vmem:[%s246_s19 + $0x8] sm:$0xff]  ;;  %674 = vmatpush3.msra.mxu0 %v323_v2  ;;  %v320_v6 = vld [vmem:[%s254_s22] sm:$0xff]  ;;  %v277_v7 = vld [vmem:[%s246_s19 + $0x10] sm:$0xff]  ;;  %316 = vst.msk [vmem:[%s801_s28 + $0x8] sm:$0xff] %vm314_vm3, %v742_v1 }
  0x11   : > { %675 = vmatprep.subr.mxu0 %v742_v1  ;;  %v321_v5 = vld [vmem:[%s254_s22 + $0x8] sm:$0xff]  ;;  %v278_v8 = vld [vmem:[%s246_s19 + $0x18] sm:$0xff]  ;;  %v402_v12 = vld [vmem:[%s262_s25] sm:$0xff]  ;;  %315 = vst.msk [vmem:[%s801_s28] sm:$0xff] %vm314_vm3, %v742_v1 }
  0x12   : > { %676 = vmatpush3.msra.mxu0 %v322_v3  ;;  %686 = vmatprep.mubr.msk.f32.mxu1 %vm406_vm2, %v402_v12  ;;  %317 = vst.msk [vmem:[%s801_s28 + $0x10] sm:$0xff] %vm314_vm3, %v742_v1  ;;  %318 = vst.msk [vmem:[%s801_s28 + $0x18] sm:$0xff] %vm314_vm3, %v742_v1  ;;  %v403_v15 = vld [vmem:[%s262_s25 + $0x8] sm:$0xff]  ;;  %v404_v16 = vld [vmem:[%s262_s25 + $0x10] sm:$0xff] }
  0x13   : > { %677 = vmatprep.subr.mxu0 %v742_v1  ;;  %v405_v17 = vld [vmem:[%s262_s25 + $0x18] sm:$0xff] }
  0x14   : > { %280 = vxpose.xlu0.b32.cont [2/4] (short) (narrow) %v276_v4, 8  ;;  %678 = vmatpush3.msra.mxu0 %v321_v5 }
  0x15   : > { %679 = vmatprep.subr.mxu0 %v742_v1 }
  0x16   : > { %680 = vmatpush3.msra.mxu0 %v320_v6 }
  0x17   : > { %v399_v18 = vld [vmem:[%s801_s28 + $0x8] sm:$0xff] }
  0x18   : > { %281 = vxpose.xlu0.b32.cont [3/4] (short) (narrow) %v277_v7, 8  ;;  %v398_v20 = vld [vmem:[%s801_s28] sm:$0xff] }
  0x19   : > { %v401_v23 = vld [vmem:[%s801_s28 + $0x18] sm:$0xff]  ;;  %v400_v26 = vld [vmem:[%s801_s28 + $0x10] sm:$0xff] }
  0x1c   : > { %282 = vxpose.xlu0.b32.end [4/4] (short) (narrow) %v278_v8, 8 }
  0x8c   : > { %v295_v9 = vpop.trf.xlu0 }
  0x8d   : > { %v311_v10 = vmul.f32 0.0625, %v295_v9 }
  0x8f   : > { %313 = vst.msk [vmem:[#allocation2] sm:$0xff] %vm312_vm1, %v311_v10 }
  0x96   : > { %v319_v11 = vld [vmem:[#allocation2] sm:$0xff] }
  0x97   : > { %682 = vmatmul.mubr.msk.f32.vlgmr.msra.gmra.mxu0 %vm312_vm1, %v319_v11 }
 0x157   : > { %v394_v13 = vpop.f32.mrf.mxu0 }
 0x158   : > { %684 = vmatprep.subr.msk.mxu1 %vm406_vm2, %v394_v13 }
 0x159   : > { %v683_v14 = vpop.f32.mrf.mxu0  ;;  %685 = vmatpush3.xpose.msk.msra.mxu1 %vm406_vm2, %v394_v13 }
 0x15c   : > { %687 = vmatmul.mubr.msk.f32.vlgmr.msra.gmra.mxu1 %vm406_vm2, %v403_v15 }
 0x15d   : > { %689 = vmatprep.mubr.msk.f32.mxu1 %vm406_vm2, %v404_v16 }
 0x160   : > { %690 = vmatmul.mubr.msk.f32.gmra.mxu1 %vm406_vm2, %v405_v17 }
 0x21c   : > { %v688_v19 = vpop.f32.mrf.mxu1 }
 0x21d   : > { %v508_v21 = vadd.f32 %v688_v19, %v399_v18 }
 0x21e   : > { %v488_v22 = vpop.f32.mrf.mxu1 }
 0x21f   : > { %513 = vst.msk [vmem:[%s801_s28 + $0x8] sm:$0xff] %vm314_vm3, %v508_v21  ;;  %v507_v24 = vadd.f32 %v488_v22, %v398_v20 }
 0x220   : > { %v691_v25 = vpop.f32.mrf.mxu1 }
 0x221   : > { %512 = vst.msk [vmem:[%s801_s28] sm:$0xff] %vm314_vm3, %v507_v24  ;;  %v510_v27 = vadd.f32 %v691_v25, %v401_v23 }
 0x222   : > { %v498_v28 = vpop.f32.mrf.mxu1 }
 0x223   : > { %515 = vst.msk [vmem:[%s801_s28 + $0x18] sm:$0xff] %vm314_vm3, %v510_v27  ;;  %v509_v29 = vadd.f32 %v498_v28, %v400_v26 }
 0x225   : > { %514 = vst.msk [vmem:[%s801_s28 + $0x10] sm:$0xff] %vm314_vm3, %v509_v29 }
 0x226 PF: > { %s13_s14 = sadd.s32 1, %s740_s14   ;;  %s841_s12 = smov %s736_s13 }
 0x227   : > { %p10_p5 = scmp.ge.s32.totalorder %s13_s14, 4   ;;  %s842_s13 = smov %s844_s15 }
 0x229   :  { %12 = sbr.rel (!%p10_p5) target bundleno = 2 (0x2), region = 72 }

// kernel: match_block_forward.7
= control target key start
LH: loop header
LB: loop body
LE: loop exit
PB: predicated region body
PF: predicated region fallthrough
CT: control target
= control target key end

     0   :  { %9 = vsyncpa [#allocation3], 0  ;;  %s819_s0 = inlined_call_operand.vmem [shape: f32[16,32], index: 0, kind: input, shape index: {}]   ;;  %s820_s1 = inlined_call_operand.vmem [shape: f32[32,32], index: 1, kind: input, shape index: {}]   ;;  %s821_s2 = inlined_call_operand.vmem [shape: f32[1,32], index: 2, kind: input, shape index: {}]   ;;  %s822_s3 = inlined_call_operand.vmem [shape: f32[16,32], index: 3, kind: input, shape index: {}]   ;;  %s823_s4 = inlined_call_operand.hbm [shape: f32[16,32], index: 4, kind: output, shape index: {}]  }
   0x1   :  { %11 = vsyncpa [#allocation3 + $0x1], 0  ;;  %s696_s15 = smov 0   ;;  %s698_s16 = smov 0  }
   0x2   :  { %s700_s17 = smov 0   ;;  %s702_s18 = smov 0  }
   0x3   :  { %s704_s19 = smov 0   ;;  %s706_s20 = smov 0  }
   0x4 LB: > { %s497_s21 = sadd.s32 4294967295, %s666_s20   ;;  %s498_s22 = sadd.s32 4294967294, %s666_s20   ;;  %s666_s20 = sphi %s706_s20, %s17_s20   ;;  %s662_s19 = sphi %s704_s19, %s830_s19   ;;  %s658_s18 = sphi %s702_s18, %s829_s18   ;;  %s654_s17 = sphi %s700_s17, %s828_s17   ;;  %s650_s16 = sphi %s698_s16, %s827_s16   ;;  %s646_s15 = sphi %s696_s15, %s826_s15  }
   0x5   : > { %s29_s23 = sadd.s32 1, %s662_s19  ;;  %s144_s24 = sadd.s32 1, %s654_s17 }
   0x6   : > { %p31_p0 = scmp.ge.s32.totalorder %s29_s23, 2  ;;  %p154_p1 = scmp.ne.s32.totalorder %s654_s17, %s650_s16 }
   0x7   : > { %p155_p2 = scmp.eq.s32.totalorder %s497_s21, 1  ;;  %p160_p3 = scmp.ne.s32.totalorder %s650_s16, %s646_s15 }
   0x8   : > { %s832_s23 = smov (%p31_p0, %s29_s23), 0  ;;  %p161_p5 = scmp.eq.s32.totalorder %s498_s22, 1 }
   0x9   : > { %p736_p4 = por %p155_p2, %p154_p1  ;;  %s139_s26 = ssub.s32 %s662_s19, %s832_s23 }
   0xa   : > { %p503_p6 = scmp.ge.s32.totalorder %s666_s20, 1  ;;  %p142_p7 = scmp.eq.s32.totalorder %s139_s26, 0 }
   0xb   : > { %p743_p8 = por %p161_p5, %p160_p3  ;;  %p211_p9 = scmp.lt.s32.totalorder %s666_s20, 3 }
   0xc   : > { %s749_s28 = scalar_select %p142_p7, %s654_s17, %s144_s24  }
   0xd   : > { %p212_p10 = pnand %p503_p6, %p211_p9 }
   0xe   : > { %p251_p11 = scmp.lt.s32.totalorder (!%p212_p10), %s658_s18, 1  ;;  %s248_s22 = sand.u32 (!%p212_p10), 1, %s650_s16  }
   0xf   : > { %215 = sbr.rel (%p212_p10) target bundleno = 247 (0xf7), region = 36  ;;  %s504_s24 = sshll.u32 (!%p212_p10), %s248_s22, 3 }
  0x10   : > { %s250_s8 = scalar_lea.vmem (!%p212_p10), [#allocation2], %s504_s24 }
  0x11   : > { %s387_s9 = sshll.u32 (!%p212_p10), %s250_s8, 4  ;;  %s388_s9 = int_to_ptr.vmem [resolvable:$true] %s387_s9 }
  0x12   : > { %s590_s14 = scalar_lea.vmem (!%p212_p10), %s388_s9, 128 }
  0x13   : > { %p591_p12 = scmp.ne.s32.totalorder (!%p212_p10), %s388_s9, %s590_s14 }
  0x14   : > { %v275_v0 = vld [vmem:[%s820_s1 + $0x18] sm:$0xff]  ;;  %vm283_vm0 = vcmask 261120   ;;  %v668_v1 = vmov 0.0   ;;  %vm669_vm1 = vmmov 0   ;;  %v274_v2 = vld [vmem:[%s820_s1 + $0x10] sm:$0xff]  ;;  %s252_s7 = scalar_select %p251_p11, %s658_s18, 1 }
  0x15   : > { %522 = vmatprep.subr.mxu0 %v668_v1  ;;  %530 = vmatprep.mubr.msk.f32.mxu0 %vm669_vm1, %v668_v1  ;;  %v273_v3 = vld [vmem:[%s820_s1 + $0x8] sm:$0xff]  ;;  %v272_v4 = vld [vmem:[%s820_s1] sm:$0xff]  ;;  %p592_p13 = pnand %p591_p12, %p736_p4 }
  0x16   : > { %523 = vmatpush3.xpose.msk.msra.mxu0 %vm283_vm0, %v275_v0  ;;  %s505_s10 = sshll.u32 %s252_s7, 3  ;;  %v507_v6 = vld [vmem:[%s821_s2] ss:$0 sm:$0xff]  ;;  %s514_s7 = sshll.u32 %s658_s18, 7 }
  0x17   : > { %524 = vmatprep.subr.mxu0 %v668_v1  ;;  %s254_s21 = scalar_lea.vmem %s819_s0, %s505_s10  ;;  %s270_s30 = scalar_lea.vmem %s822_s3, %s505_s10 }
  0x18   : > { %v271_v5 = vld [vmem:[%s254_s21] sm:$0xff]  ;;  %s385_s13 = scalar_lea.hbm %s823_s4, %s514_s7  ;;  %s373_s10 = scalar_lea.sflag [#allocation3], %s248_s22 }
  0x19   : > { %v369_v8 = vld [vmem:[%s270_s30] sm:$0xff]  ;;  %p593_p0 = pneg %p592_p13  ;;  %s670_s21 = smov [#allocation2]  }
  0x1a   : > { %525 = vmatpush3.xpose.msk.msra.mxu0 %vm283_vm0, %v274_v2  ;;  %s594_s18 = sshll.u32 %s670_s21, 4  ;;  %s595_s18 = int_to_ptr.vmem [resolvable:$false] %s594_s18 }
  0x1b   : > { %526 = vmatprep.subr.mxu0 %v668_v1  ;;  %s596_s24 = scalar_lea.vmem %s595_s18, 256  ;;  %p597_p1 = scmp.lt.s32.totalorder %s388_s9, %s595_s18 }
  0x1c   : > { %p598_p2 = scmp.lt.s32.totalorder %s596_s24, %s590_s14 }
  0x1e   : > { %527 = vmatpush3.xpose.msk.msra.mxu0 %vm283_vm0, %v273_v3  ;;  %p599_p3 = por %p598_p2, %p597_p1 }
  0x1f   : > { %528 = vmatprep.subr.mxu0 %v668_v1 }
  0x20   : > { %p600_p5 = pnand %p599_p3, %p593_p0 }
  0x22   : > { %529 = vmatpush3.xpose.msk.msra.mxu0 %vm283_vm0, %v272_v4 }
  0x25   : > { %531 = vmatmul.mubr.msk.f32.vlgmr.msra.gmra.mxu0 %vm283_vm0, %v271_v5 }
  0xe5   : > { %v365_v7 = vpop.f32.mrf.mxu0 }
  0xe6   : > { %v366_v9 = vadd.f32 %v507_v6, %v365_v7 }
  0xe7   : > { %v532_v10 = vpop.f32.mrf.mxu0 }
  0xe8   : > { %v370_v11 = vadd.f32 %v369_v8, %v366_v9 }
  0xea   : > { %371 = vst.msk [vmem:[%s250_s8] sm:$0xff] %vm283_vm0, %v370_v11 }
  0xeb   : > { %603 = shalt.err (!%p600_p5)
}
  0xec   : > { %s604_s26 = scalar_lea.hbm %s385_s13, 128  ;;  %s608_s30 = scalar_lea.hbm %s823_s4, 256 }
  0xed   : > { %p605_p6 = scmp.ne.s32.totalorder %s385_s13, %s604_s26  ;;  %p609_p10 = scmp.lt.s32.totalorder %s385_s13, %s823_s4 }
  0xee   : > { %p610_p11 = scmp.lt.s32.totalorder %s608_s30, %s604_s26 }
  0xef   : > { %p606_p7 = pnand %p605_p6, %p736_p4 }
  0xf0   : > { %p611_p12 = por %p610_p11, %p609_p10 }
  0xf1   : > { %p607_p9 = pneg %p606_p7 }
  0xf3   : > { %p612_p13 = pnand %p611_p12, %p607_p9 }
  0xf5   : > { %615 = shalt.err (!%p612_p13)
}
  0xf6   : > { %533 = dma.vmem_to_hbm [thread:$0]  (%p736_p4), %s388_s9, 128, %s385_s13, %s373_s10  }
  0xf7 PF: > { %p539_p0 = scmp.ge.s32.totalorder %s666_s20, 2  ;;  %s399_s7 = sand.u32 1, %s646_s15  }
  0xf8   : > { %s400_s8 = scalar_lea.sflag [#allocation3], %s399_s7 }
  0xf9   : > { %p536_p1 = pnand %p539_p0, %p743_p8 }
  0xfb   : > { %p537_p2 = pneg %p536_p1 }
  0xfd   : > { %641 = dma.done.wait (%p537_p2), %s400_s8, 128  }
  0xfe   : > { %643 = vsyncadd (%p537_p2), %s400_s8, 4294967168  ;;  %s17_s20 = sadd.s32 1, %s666_s20   ;;  %s826_s15 = smov %s650_s16 }
  0xff   : > { %p14_p3 = scmp.ge.s32.totalorder %s17_s20, 4   ;;  %s827_s16 = smov %s654_s17 }
 0x100   : > { %s828_s17 = smov %s749_s28  ;;  %s829_s18 = smov %s662_s19 }
 0x101   : > { %s830_s19 = smov %s832_s23  ;;  %16 = sbr.rel (!%p14_p3) target bundleno = 4 (0x4), region = 80 }
 0x106   :  { %405 = vsyncpa [#allocation3], 1 }
 0x107   :  { %407 = vsyncpa [#allocation3 + $0x1], 1 }

</bundles_post_ra>
